<compile_context>
chip_gen: v6e
topology: v6e:2x2x1
jax: 0.10.0
libtpu: 0.0.40
codegen_flags: <defaults>
</compile_context>

<pallas_src>
import functools

import jax
import jax.numpy as jnp
import numpy as np
from jax.experimental import pallas as pl
from jax.experimental.pallas import tpu as pltpu

# Wide lane dims tried first (unmasked, lane-dense stores); all multiples of 128.
_LANE_CANDIDATES = (4096, 2048, 1024, 512, 256, 128)
# ~2 MiB per f32 block -> with input+output double-buffered ~8-10 MiB resident,
# which fits the scoped-VMEM defaults on v5e (16 MiB), v6e and v7x (32 MiB).
_TARGET_BLOCK_ELEMS = 512 * 1024


def _quant_kernel(clip_ref, x_ref, o_ref, *, num_bits, dequantize):
    """clip_ref: (1,) f32 in SMEM (learned clip value).
    x_ref/o_ref: (tm, lanes) VMEM tiles in the activation's native dtype."""
    clip_val = clip_ref[0]
    n = jnp.float32(2.0 ** num_bits - 1.0)
    scale = n / clip_val                      # scalar; NOTE: clip_val <= 0 would give inf/NaN
    # saturation_min == 0 -> zero_point = round(scale * 0) == 0 exactly, so it is dropped.

    x = x_ref[...].astype(jnp.float32)        # cast in-register (v5e has no bf16 VPU)
    y = jnp.clip(x, 0.0, clip_val)            # clamp(input, 0, clip_val)
    q = jnp.round(y * scale)                  # linear_quantize (zero_point == 0)
    if dequantize:
        q = q * (clip_val / n)                # linear_dequantize via scalar inverse-scale
    o_ref[...] = q.astype(o_ref.dtype)


def learned_clipped_linear_quantization(x, clip_val, *, num_bits=8, dequantize=True):
    """Pallas implementation of LearnedClippedLinearQuantization.forward."""
    orig_shape = x.shape
    orig_dtype = x.dtype
    total = int(np.prod(orig_shape)) if orig_shape else 1

    flat = x.reshape(-1)

    # Pick the widest lane dim that divides the element count (no padding pass);
    # otherwise fall back to 128 lanes and pad only the small ragged tail.
    lanes = 128
    for cand in _LANE_CANDIDATES:
        if total % cand == 0:
            lanes = cand
            break

    pad = (-total) % lanes
    if pad:
        flat = jnp.pad(flat, (0, pad))        # at most lanes-1 extra elements
    rows = (total + pad) // lanes
    x2 = flat.reshape(rows, lanes)            # lane-dense slab, native dtype

    # ~2 MiB blocks; tm is a power of two >= 128 here, so it satisfies the
    # (8,128) block constraint for f32/bf16/int8 tilings alike.
    tm = max(8, _TARGET_BLOCK_ELEMS // lanes)
    if rows <= tm:
        tm = rows                             # single block == full array (always legal)
    grid = (pl.cdiv(rows, tm),)               # last block may be partial; Pallas masks it

    kernel = functools.partial(_quant_kernel, num_bits=num_bits,
                               dequantize=dequantize)

    out2 = pl.pallas_call(
        kernel,
        out_shape=jax.ShapeDtypeStruct((rows, lanes), orig_dtype),
        grid=grid,
        in_specs=[
            pl.BlockSpec(memory_space=pltpu.SMEM),            # clip_val scalar
            pl.BlockSpec((tm, lanes), lambda i: (i, 0)),      # x tile
        ],
        out_specs=pl.BlockSpec((tm, lanes), lambda i: (i, 0)),
        compiler_params=pltpu.CompilerParams(
            dimension_semantics=("parallel",),                # shard grid across v7x's 2 TCs
            vmem_limit_bytes=32 * 1024 * 1024,                # safe on v5e/v6e/v7x; >> working set
        ),
    )(jnp.asarray(clip_val, dtype=jnp.float32).reshape(-1), x2)

    if pad:
        return out2.reshape(-1)[:total].reshape(orig_shape)
    return out2.reshape(orig_shape)


def _reference(x, clip_val, num_bits=8, dequantize=True):
    """Pure-JAX reference mirroring the PyTorch forward."""
    n = 2.0 ** num_bits - 1.0
    c = clip_val[0]
    scale = n / c
    zero_point = jnp.round(scale * 0.0)
    y = jnp.clip(x, 0.0, c)
    q = jnp.round(scale * y - zero_point)
    if dequantize:
        q = (q + zero_point) / scale
    return q


if __name__ == "__main__":
    key = jax.random.PRNGKey(0)
    # NCHW activation, like a PyTorch conv feature map.
    x = jax.random.normal(key, (2, 4, 16, 16), dtype=jnp.float32) * 3.0

    # Module __init__: num_bits, init_act_clip_val -> clip_val is a 1-element param.
    num_bits = 8
    init_act_clip_val = 6.0
    clip_val = jnp.array([init_act_clip_val], dtype=jnp.float32)

    # Main path (dequantize=True). atol loosened to 1e-5: the kernel multiplies by a
    # precomputed scalar inverse-scale, which can differ from the reference divide by 1 ULP.
    out = learned_clipped_linear_quantization(
        x, clip_val, num_bits=num_bits, dequantize=True)
    out = jax.block_until_ready(out)
    ref = _reference(x, clip_val, num_bits=num_bits, dequantize=True)
    np.testing.assert_allclose(np.asarray(out), np.asarray(ref),
                               rtol=1e-6, atol=1e-5)
    assert out.shape == x.shape and out.dtype == x.dtype

    # Ragged size (not a multiple of 128) exercises the padded-tail path.
    x_r = jax.random.normal(jax.random.PRNGKey(1), (2, 3, 5, 7),
                            dtype=jnp.float32) * 3.0
    out_r = jax.block_until_ready(
        learned_clipped_linear_quantization(x_r, clip_val, num_bits=num_bits))
    ref_r = _reference(x_r, clip_val, num_bits=num_bits)
    np.testing.assert_allclose(np.asarray(out_r), np.asarray(ref_r),
                               rtol=1e-6, atol=1e-5)
    assert out_r.shape == x_r.shape and out_r.dtype == x_r.dtype

    # Pure-quantize path (dequantize=False) is bit-exact.
    out_q = jax.block_until_ready(
        learned_clipped_linear_quantization(x, clip_val, num_bits=num_bits,
                                            dequantize=False))
    ref_q = _reference(x, clip_val, num_bits=num_bits, dequantize=False)
    np.testing.assert_allclose(np.asarray(out_q), np.asarray(ref_q),
                               rtol=0.0, atol=0.0)

    print("KERNEL_OK")
</pallas_src>

<mosaic_0001>
module attributes {stable_mosaic.version = 11 : i64} {
  func.func @_quant_kernel(%arg0: i32, %arg1: memref<1xf32, #tpu.memory_space<smem>>, %arg2: memref<1x2048xf32, #tpu.memory_space<vmem>>, %arg3: memref<1x2048xf32, #tpu.memory_space<vmem>>) attributes {dimension_semantics = [#tpu.dimension_semantics<parallel>], iteration_bounds = array<i64: 1>, scalar_prefetch = 0 : i64, scratch_operands = 0 : i64, tpu.core_type = #tpu.core_type<tc>, window_params = [{transform_indices = @transform_0, window_bounds = array<i64: 1>}, {transform_indices = @transform_1, window_bounds = array<i64: 1, 2048>}, {transform_indices = @transform_2, window_bounds = array<i64: 1, 2048>}]} {
    %c0 = arith.constant 0 : index
    %0 = memref.load %arg1[%c0] : memref<1xf32, #tpu.memory_space<smem>>
    %cst = arith.constant 2.550000e+02 : f32
    %1 = arith.divf %cst, %0 : f32
    %c0_0 = arith.constant 0 : index
    %c0_1 = arith.constant 0 : index
    %2 = vector.load %arg2[%c0_0, %c0_1] : memref<1x2048xf32, #tpu.memory_space<vmem>>, vector<1x2048xf32>
    %cst_2 = arith.constant 0.000000e+00 : f32
    %3 = vector.broadcast %cst_2 : f32 to vector<1x2048xf32>
    %4 = arith.maximumf %3, %2 : vector<1x2048xf32>
    %5 = vector.broadcast %0 : f32 to vector<1x2048xf32>
    %6 = arith.minimumf %5, %4 : vector<1x2048xf32>
    %7 = vector.broadcast %1 : f32 to vector<1x2048xf32>
    %8 = arith.mulf %6, %7 : vector<1x2048xf32>
    %9 = math.roundeven %8 : vector<1x2048xf32>
    %cst_3 = arith.constant 2.550000e+02 : f32
    %10 = arith.divf %0, %cst_3 : f32
    %11 = vector.broadcast %10 : f32 to vector<1x2048xf32>
    %12 = arith.mulf %9, %11 : vector<1x2048xf32>
    %c0_4 = arith.constant 0 : index
    %c0_5 = arith.constant 0 : index
    %13 = vector.load %arg3[%c0_4, %c0_5] : memref<1x2048xf32, #tpu.memory_space<vmem>>, vector<1x2048xf32>
    tpu.vector_store %arg3[%c0_4, %c0_5], %12 {strides = array<i32>} : memref<1x2048xf32, #tpu.memory_space<vmem>>, vector<1x2048xf32>,
    return
  }
  func.func @transform_0(%arg0: i32) -> i32 {
    %c0_i32 = arith.constant 0 : i32
    %c0_i32_0 = arith.constant 0 : i32
    return %c0_i32 : i32
  }
  func.func @transform_1(%arg0: i32) -> (i32, i32) {
    %c0_i32 = arith.constant 0 : i32
    %c0_i32_0 = arith.constant 0 : i32
    return %arg0, %c0_i32 : i32, i32
  }
  func.func @transform_2(%arg0: i32) -> (i32, i32) {
    %c0_i32 = arith.constant 0 : i32
    %c0_i32_0 = arith.constant 0 : i32
    return %arg0, %c0_i32 : i32, i32
  }
}

</mosaic_0001>

<bundles_post_ra>
// kernel: tpu_custom_call.1
= control target key start
LH: loop header
LB: loop body
LE: loop exit
PB: predicated region body
PF: predicated region fallthrough
CT: control target
= control target key end

     0   :  { %8 = vsyncpa [#allocation4], 0  ;;  %s160_s0 = inlined_call_operand.<no memory space> [shape: f32[1], index: 0, kind: input, shape index: {}]   ;;  %s161_s1 = inlined_call_operand.hbm [shape: f32[1,2048], index: 1, kind: input, shape index: {}]   ;;  %s162_s2 = inlined_call_operand.hbm [shape: f32[1,2048], index: 2, kind: output, shape index: {}]  }
   0x1   :  { %9 = vsyncpa [#allocation5], 0  ;;  %s131_s9 = smov [#allocation3]  }
   0x2   :  { %s18_s10 = sshll.u32 %s131_s9, 4  ;;  %s19_s10 = int_to_ptr.vmem [resolvable:$true] %s18_s10 }
   0x3   :  { %s95_s11 = scalar_lea.vmem %s19_s10, 256  ;;  %p100_p1 = scmp.lt.s32.totalorder %s19_s10, %s19_s10 }
   0x4   :  { %p96_p0 = scmp.ne.s32.totalorder %s19_s10, %s95_s11  ;;  %p101_p2 = scmp.lt.s32.totalorder %s95_s11, %s95_s11 }
   0x6   :  { %p102_p3 = por %p101_p2, %p100_p1 }
   0x8   :  { %p103_p4 = pnand %p102_p3, %p96_p0 }
   0xa   :  { %106 = shalt.err (!%p103_p4)
}
   0xb   :  { %21 = dma.hbm_to_vmem [thread:$0]  %s161_s1, 256, %s19_s10, [#allocation4]   ;;  %v26_v0 = vstv %s160_s0 }
   0xc   :  { %127 = dma.done.wait [#allocation4], 256  }
   0xd   :  { %128 = vsyncadd [#allocation4], 4294967040  ;;  %85 = vrcp.f32 %v26_v0  ;;  %v30_v2 = vld [vmem:[#allocation3] sm:$0xff]  ;;  %v31_v3 = vld [vmem:[#allocation3 + $0x8] sm:$0xff]  ;;  %s44_s19 = smul.f32 0.003921569, %s160_s0 }
   0xe   :  { %v32_v4 = vmax.f32 %v30_v2, 0.0  ;;  %v33_v5 = vmax.f32 %v31_v3, 0.0  ;;  %s132_s20 = smov [#allocation6]  }
   0xf   :  { %v45_v23 = vstv %s44_s19  ;;  %s56_s21 = sshll.u32 %s132_s20, 4  ;;  %s57_s21 = int_to_ptr.vmem [resolvable:$true] %s56_s21 }
  0x10   :  { %v35_v6 = vmin.f32 %v26_v0, %v32_v4  ;;  %v36_v7 = vmin.f32 %v26_v0, %v33_v5  ;;  %s107_s0 = scalar_lea.vmem %s57_s21, 256  ;;  %p112_p6 = scmp.lt.s32.totalorder %s57_s21, %s57_s21 }
  0x11   :  { %p108_p5 = scmp.ne.s32.totalorder %s57_s21, %s107_s0  ;;  %p113_p7 = scmp.lt.s32.totalorder %s107_s0, %s107_s0 }
  0x13   :  { %p114_p8 = por %p113_p7, %p112_p6 }
  0x15   :  { %p115_p9 = pnand %p114_p8, %p108_p5 }
  0x1a   :  { %v86_v1 = vpop.eup %85 }
  0x1b   :  { %65 = vpush %v86_v1 }
  0x4c   :  { %s66_s16 = spop %65 }
  0x4d   :  { %s29_s17 = smul.f32 255.0, %s66_s16 }
  0x4f   :  { %v37_v8 = vstv %s29_s17 }
  0x50   :  { %v38_v9 = vmul.f32 %v37_v8, %v35_v6  ;;  %v39_v10 = vmul.f32 %v37_v8, %v36_v7 }
  0x52   :  { %v69_v11 = vcvt.f32.s32 %v38_v9  ;;  %v77_v12 = vcvt.f32.s32 %v39_v10  ;;  %v67_v15 = vand.u32 2147483647, %v38_v9  ;;  %v75_v16 = vand.u32 2147483647, %v39_v10 }
  0x53   :  { %v72_v18 = vand.u32 2147483648, %v38_v9  ;;  %v80_v20 = vand.u32 2147483648, %v39_v10 }
  0x54   :  { %v70_v13 = vcvt.s32.f32 %v69_v11  ;;  %v78_v14 = vcvt.s32.f32 %v77_v12  ;;  %vm68_vm0 = vcmp.lt.f32.partialorder %v67_v15, 8388608.0  ;;  %vm76_vm1 = vcmp.lt.f32.partialorder %v75_v16, 8388608.0 }
  0x56   :  { %v71_v17 = vand.u32 2147483647, %v70_v13  ;;  %v79_v19 = vand.u32 2147483647, %v78_v14 }
  0x58   :  { %v73_v21 = vor.u32 %v72_v18, %v71_v17  ;;  %v81_v22 = vor.u32 %v80_v20, %v79_v19 }
  0x5a   :  { %v74_v24 = vsel %vm68_vm0, %v73_v21, %v38_v9  ;;  %v82_v25 = vsel %vm76_vm1, %v81_v22, %v39_v10 }
  0x5b   :  { %v46_v26 = vmul.f32 %v74_v24, %v45_v23  ;;  %v47_v27 = vmul.f32 %v82_v25, %v45_v23 }
  0x5d   :  { %48 = vst [vmem:[#allocation6] sm:$0xff] %v46_v26  ;;  %49 = vst [vmem:[#allocation6 + $0x8] sm:$0xff] %v47_v27 }
  0x5e   :  { %118 = shalt.err (!%p115_p9)
}
  0x5f   :  { %59 = dma.vmem_to_hbm [thread:$0]  %s57_s21, 256, %s162_s2, [#allocation5]  }
  0x60   :  { %129 = dma.done.wait [#allocation5], 256  }
  0x61   :  { %130 = vsyncadd [#allocation5], 4294967040 }
  0x62   :  { %63 = vsyncpa [#allocation4], 1 }
  0x63   :  { %64 = vsyncpa [#allocation5], 1 }

</bundles_post_ra>
